<compile_context>
chip_gen: v7x
topology: tpu7x:2x2x1
jax: 0.10.0
libtpu: 0.0.40
codegen_flags: <defaults>
</compile_context>

<pallas_src>
import functools

import jax
import jax.numpy as jnp
from jax.experimental import pallas as pl
from jax.experimental.pallas import tpu as pltpu

NEG_SLOPE = 0.2     # LeakyReLU slope
BN_EPS = 1e-5       # nn.BatchNorm1d default eps
PACK = 4            # batch rows packed per vreg row (4 * 32 features = 128 lanes)
MAX_TILE_P = 2048   # packed rows per grid step (= 8192 batch rows)


def _round_up(x, m):
    return ((x + m - 1) // m) * m


def _choose_tile_p(p_rows, max_tile_p=MAX_TILE_P):
    """Packed-row tile size.

    Small batches: a single tile equal to the full array (no alignment padding
    needed since block == full dims).  Larger batches: >=2 lane/sublane-aligned
    tiles so both v7x TensorCores get work; ~free on single-TC v5e/v6e because
    the last tile may simply be partial (no HBM row padding is ever added).
    """
    if p_rows < 256:
        return p_rows
    return min(max_tile_p, _round_up(pl.cdiv(p_rows, 2), 128))


def _fold_bn(w, b, gamma, beta, mean, var):
    """Fold eval-mode BatchNorm1d into the preceding Linear (kept in f32)."""
    w = jnp.asarray(w, jnp.float32)
    b = jnp.asarray(b, jnp.float32)
    scale = jnp.asarray(gamma, jnp.float32) * jax.lax.rsqrt(
        jnp.asarray(var, jnp.float32) + BN_EPS)
    w_f = w * scale[None, :]
    b_f = (b - jnp.asarray(mean, jnp.float32)) * scale + jnp.asarray(beta, jnp.float32)
    return w_f, b_f


def _block_diag(w, pack):
    """block_diag(w, w, ..., w) with `pack` copies, f32."""
    fin, fout = w.shape
    m = jnp.zeros((pack * fin, pack * fout), jnp.float32)
    for i in range(pack):
        m = m.at[i * fin:(i + 1) * fin, i * fout:(i + 1) * fout].set(w)
    return m


def _proxy_mlp_kernel(num_inputs, num_hidden, compute_dtype, *refs):
    """Fused MLP forward for one packed batch tile.

    refs = [x_0 .. x_{n-1},                          # packed inputs (tile_p, PACK*f_i)
            W1_0 .. W1_{n-1}, b1,                    # layer-1 split weights + bias
            W_2, b_2, ..., W_h, b_h,                 # remaining hidden layers
            Wout_T (PACK, PACK*H), b_out (1,1),
            out_ref (PACK, tile_p)]
    Weights are block-diagonal packed, BN pre-folded, in compute_dtype;
    biases are f32.
    """
    in_refs = refs[:num_inputs]
    out_ref = refs[-1]
    p = refs[num_inputs:-1]

    # ---- layer 1: concat fused via per-input row-blocks of W1 (BN folded) ----
    z = p[num_inputs][...]                                  # (1, PACK*H) f32 bias
    for i in range(num_inputs):
        w = p[i][...]                                       # (PACK*f_i, PACK*H)
        xi = in_refs[i][...].astype(compute_dtype)          # cast inside the kernel
        z = z + jnp.dot(xi, w, preferred_element_type=jnp.float32)
    z = jnp.maximum(z, NEG_SLOPE * z)                       # LeakyReLU(0.2)
    h = z.astype(compute_dtype)
    # Dropout(p=0.5) -> identity in eval mode.

    # ---- hidden layers 2..num_hidden ----
    off = num_inputs + 1
    for l in range(1, num_hidden):
        w = p[off + 2 * (l - 1)][...]                       # (PACK*H, PACK*H)
        b = p[off + 2 * (l - 1) + 1][...]                   # (1, PACK*H) f32
        z = jnp.dot(h, w, preferred_element_type=jnp.float32) + b
        z = jnp.maximum(z, NEG_SLOPE * z)
        h = z.astype(compute_dtype)

    # ---- output layer: lane-dense transposed projection (PACK, tile_p) ----
    w_out_t = p[-2][...]                                    # (PACK, PACK*H)
    b_out = p[-1][...]                                      # (1, 1) f32
    out = jax.lax.dot_general(w_out_t, h, (((1,), (1,)), ((), ())),
                              preferred_element_type=jnp.float32) + b_out
    out_ref[...] = out.astype(out_ref.dtype)


def proxy_mlp_forward(x_list, params, *, concat=True, tile_p=None,
                      compute_dtype=jnp.bfloat16, pack=PACK):
    """Run the fused ProxyMLP forward with a Pallas kernel.

    x_list: [comp (B, in_feat), sg (B,), lattice (B, 6)] if concat else comp.
    params: dict with
        "hidden": list of tuples (W (Fin,Fout), b, gamma, beta, mean, var)
        "out":    (W (H,1), b (1,))
    """
    # --- inputs kept separate (concat is fused into layer 1 in the kernel) ---
    if concat:
        comp, sg, lattice = x_list
        raw = [comp, sg[:, None], lattice]
    else:
        x = x_list[0] if isinstance(x_list, (list, tuple)) else x_list
        raw = [x]
    raw = [jnp.asarray(v, jnp.float32) for v in raw]
    b_dim = raw[0].shape[0]
    feats = [int(v.shape[1]) for v in raw]

    num_hidden = len(params["hidden"])
    assert num_hidden >= 1, "proxy_mlp_forward requires num_layers >= 2"

    # --- lane packing: `pack` consecutive batch rows -> lanes (free reshape) ---
    b_pk = _round_up(b_dim, pack)
    if b_pk != b_dim:  # only pads up to pack-1 rows, and only when misaligned
        raw = [jnp.pad(v, ((0, b_pk - b_dim), (0, 0))) for v in raw]
    p_rows = b_pk // pack
    inputs = [v.reshape(p_rows, pack * f) for v, f in zip(raw, feats)]

    if tile_p is None:
        tile_p = _choose_tile_p(p_rows)
    num_tiles = pl.cdiv(p_rows, tile_p)

    # --- parameters: fold BN (f32), split layer 1 per input, block-diag pack ---
    flat = []
    w1f, b1f = _fold_bn(*params["hidden"][0])
    row = 0
    for f in feats:
        flat.append(_block_diag(w1f[row:row + f], pack).astype(compute_dtype))
        row += f
    flat.append(jnp.tile(b1f, pack).reshape(1, -1))                   # (1, pack*H) f32
    for layer in params["hidden"][1:]:
        wf, bf = _fold_bn(*layer)
        flat.append(_block_diag(wf, pack).astype(compute_dtype))      # (pack*H, pack*H)
        flat.append(jnp.tile(bf, pack).reshape(1, -1))                # (1, pack*H) f32
    w_out, b_out = params["out"]
    w_out_bd = _block_diag(jnp.asarray(w_out, jnp.float32).reshape(-1, 1), pack)
    flat.append(w_out_bd.T.astype(compute_dtype))                     # (pack, pack*H)
    flat.append(jnp.asarray(b_out, jnp.float32).reshape(1, 1))        # (1, 1) f32

    # --- pallas call -----------------------------------------------------------
    in_specs = [pl.BlockSpec((tile_p, v.shape[1]), lambda i: (i, 0)) for v in inputs]
    for q in flat:
        # Parameters are tiny: full array, constant index_map (stays resident).
        in_specs.append(pl.BlockSpec(q.shape, lambda i: (0, 0)))
    out_spec = pl.BlockSpec((pack, tile_p), lambda i: (0, i))

    kernel = functools.partial(_proxy_mlp_kernel, len(inputs), num_hidden,
                               compute_dtype)
    out = pl.pallas_call(
        kernel,
        out_shape=jax.ShapeDtypeStruct((pack, num_tiles * tile_p), jnp.float32),
        grid_spec=pltpu.PrefetchScalarGridSpec(
            num_scalar_prefetch=0,
            grid=(num_tiles,),
            in_specs=in_specs,
            out_specs=out_spec,
        ),
        compiler_params=pltpu.CompilerParams(
            dimension_semantics=("parallel",)),
    )(*inputs, *flat)

    # out[j, p] is the prediction for batch row p*pack + j; rows beyond b_dim
    # (pack padding / partial-tile garbage) are sliced off.
    return out.T.reshape(-1, 1)[:b_dim]


def _reference_forward(x_list, params, concat=True):
    """Pure-JAX reference matching PyTorch eval-mode forward."""
    if concat:
        comp, sg, lattice = x_list
        x = jnp.concatenate([comp, sg[:, None], lattice], axis=-1)
    else:
        x = x_list[0]
    for (w, b, g, be, mu, var) in params["hidden"]:
        x = x @ w + b
        x = (x - mu) / jnp.sqrt(var + BN_EPS) * g + be
        x = jnp.where(x > 0, x, NEG_SLOPE * x)
    w_out, b_out = params["out"]
    return x @ w_out + b_out


def _init_params(key, in_feat, num_layers, hidden_channels, concat=True):
    """Deterministic synthetic parameters with the module's shapes."""
    if concat:
        in_feat = in_feat + 7
    hidden = []
    fin = in_feat
    for _ in range(num_layers - 1):
        fout = hidden_channels
        key, kw, kb, kg, kbe, km, kv = jax.random.split(key, 7)
        bound = 1.0 / jnp.sqrt(fin)
        w = jax.random.uniform(kw, (fin, fout), jnp.float32, -bound, bound)
        b = jax.random.uniform(kb, (fout,), jnp.float32, -bound, bound)
        gamma = 1.0 + 0.1 * jax.random.normal(kg, (fout,), jnp.float32)
        beta = 0.1 * jax.random.normal(kbe, (fout,), jnp.float32)
        mean = 0.1 * jax.random.normal(km, (fout,), jnp.float32)
        var = jax.random.uniform(kv, (fout,), jnp.float32, 0.5, 1.5)
        hidden.append((w, b, gamma, beta, mean, var))
        fin = fout
    if num_layers < 1:
        fin = in_feat
    key, kw, kb = jax.random.split(key, 3)
    bound = 1.0 / jnp.sqrt(fin)
    w_out = jax.random.uniform(kw, (fin, 1), jnp.float32, -bound, bound)
    b_out = jax.random.uniform(kb, (1,), jnp.float32, -bound, bound)
    return {"hidden": hidden, "out": (w_out, b_out)}


if __name__ == "__main__":
    # Make the pure-JAX reference use true-f32 matmuls so the strict check is fair.
    jax.config.update("jax_default_matmul_precision", "highest")

    # Small shapes consistent with the module: composition size 25 (+7 from
    # space-group + lattice when concat=True -> 32), 3 layers, hidden 32.
    B = 8
    IN_FEAT = 25
    NUM_LAYERS = 3
    HIDDEN = 32

    key = jax.random.PRNGKey(0)
    key, k_comp, k_sg, k_lat, k_par = jax.random.split(key, 5)
    comp = jax.random.normal(k_comp, (B, IN_FEAT), jnp.float32)
    sg = jax.random.uniform(k_sg, (B,), jnp.float32, 1.0, 230.0)       # space group
    lattice = jax.random.normal(k_lat, (B, 6), jnp.float32)            # lattice params
    params = _init_params(k_par, IN_FEAT, NUM_LAYERS, HIDDEN, concat=True)

    ref = _reference_forward([comp, sg, lattice], params, concat=True)

    # 1) Strict check with the f32 compute path (single tile, grid = 1).
    out_f32 = proxy_mlp_forward([comp, sg, lattice], params, concat=True,
                                compute_dtype=jnp.float32)
    out_f32 = jax.block_until_ready(out_f32)
    assert out_f32.shape == (B, 1)
    assert jnp.allclose(out_f32, ref, rtol=2e-3, atol=2e-3), "f32 mismatch vs reference"

    # 2) Default bf16 MXU path (f32 accumulation) -- looser, scale-aware check.
    out_bf = proxy_mlp_forward([comp, sg, lattice], params, concat=True)
    out_bf = jax.block_until_ready(out_bf)
    err = float(jnp.max(jnp.abs(out_bf - ref)))
    scale = float(jnp.max(jnp.abs(ref)))
    assert err <= 0.2 * scale + 0.2, f"bf16 mismatch: err={err} scale={scale}"

    # 3) Multi-tile path: partial last tile + batch not a multiple of the pack
    #    factor (forced small tile_p to exercise the pipelined grid at small B).
    B2 = 1203
    key, k2c, k2s, k2l = jax.random.split(key, 4)
    comp2 = jax.random.normal(k2c, (B2, IN_FEAT), jnp.float32)
    sg2 = jax.random.uniform(k2s, (B2,), jnp.float32, 1.0, 230.0)
    lat2 = jax.random.normal(k2l, (B2, 6), jnp.float32)
    ref2 = _reference_forward([comp2, sg2, lat2], params, concat=True)
    out2 = proxy_mlp_forward([comp2, sg2, lat2], params, concat=True,
                             compute_dtype=jnp.float32, tile_p=128)
    out2 = jax.block_until_ready(out2)
    assert out2.shape == (B2, 1)
    assert jnp.allclose(out2, ref2, rtol=2e-3, atol=2e-3), "multi-tile mismatch"

    print("KERNEL_OK")
</pallas_src>

<mosaic_0001>
module attributes {stable_mosaic.version = 11 : i64} {
  func.func @_proxy_mlp_kernel(%arg0: i32, %arg1: memref<2x100xf32, #tpu.memory_space<vmem>>, %arg2: memref<2x4xf32, #tpu.memory_space<vmem>>, %arg3: memref<2x24xf32, #tpu.memory_space<vmem>>, %arg4: memref<100x128xf32, #tpu.memory_space<vmem>>, %arg5: memref<4x128xf32, #tpu.memory_space<vmem>>, %arg6: memref<24x128xf32, #tpu.memory_space<vmem>>, %arg7: memref<1x128xf32, #tpu.memory_space<vmem>>, %arg8: memref<128x128xf32, #tpu.memory_space<vmem>>, %arg9: memref<1x128xf32, #tpu.memory_space<vmem>>, %arg10: memref<4x128xf32, #tpu.memory_space<vmem>>, %arg11: memref<1x1xf32, #tpu.memory_space<vmem>>, %arg12: memref<4x2xf32, #tpu.memory_space<vmem>>) attributes {dimension_semantics = [#tpu.dimension_semantics<parallel>], iteration_bounds = array<i64: 1>, scalar_prefetch = 0 : i64, scratch_operands = 0 : i64, tpu.core_type = #tpu.core_type<tc>, window_params = [{transform_indices = @transform_0, window_bounds = array<i64: 2, 100>}, {transform_indices = @transform_1, window_bounds = array<i64: 2, 4>}, {transform_indices = @transform_2, window_bounds = array<i64: 2, 24>}, {pipeline_mode = #tpu.pipeline_mode<synchronous>, transform_indices = @transform_3, window_bounds = array<i64: 100, 128>}, {pipeline_mode = #tpu.pipeline_mode<synchronous>, transform_indices = @transform_4, window_bounds = array<i64: 4, 128>}, {pipeline_mode = #tpu.pipeline_mode<synchronous>, transform_indices = @transform_5, window_bounds = array<i64: 24, 128>}, {pipeline_mode = #tpu.pipeline_mode<synchronous>, transform_indices = @transform_6, window_bounds = array<i64: 1, 128>}, {pipeline_mode = #tpu.pipeline_mode<synchronous>, transform_indices = @transform_7, window_bounds = array<i64: 128, 128>}, {pipeline_mode = #tpu.pipeline_mode<synchronous>, transform_indices = @transform_8, window_bounds = array<i64: 1, 128>}, {pipeline_mode = #tpu.pipeline_mode<synchronous>, transform_indices = @transform_9, window_bounds = array<i64: 4, 128>}, {pipeline_mode = #tpu.pipeline_mode<synchronous>, transform_indices = @transform_10, window_bounds = array<i64: 1, 1>}, {transform_indices = @transform_11, window_bounds = array<i64: 4, 2>}]} {
    %c0 = arith.constant 0 : index
    %c0_0 = arith.constant 0 : index
    %0 = vector.load %arg7[%c0, %c0_0] : memref<1x128xf32, #tpu.memory_space<vmem>>, vector<1x128xf32>
    %c0_1 = arith.constant 0 : index
    %c0_2 = arith.constant 0 : index
    %1 = vector.load %arg4[%c0_1, %c0_2] : memref<100x128xf32, #tpu.memory_space<vmem>>, vector<100x128xf32>
    %c0_3 = arith.constant 0 : index
    %c0_4 = arith.constant 0 : index
    %2 = vector.load %arg1[%c0_3, %c0_4] : memref<2x100xf32, #tpu.memory_space<vmem>>, vector<2x100xf32>
    %cst = arith.constant dense<0.000000e+00> : vector<2x128xf32>
    %3 = tpu.matmul %2, %1, %cst {dimension_numbers = #tpu.dot_dimension_numbers<[1], [0], [0], [1], [0, 0, 1, 1], [], []>, precision = #tpu.contract_precision<fp32>} : vector<2x100xf32>, vector<100x128xf32>, vector<2x128xf32> -> vector<2x128xf32>
    %4 = vector.broadcast %0 : vector<1x128xf32> to vector<2x128xf32>
    %5 = arith.addf %4, %3 : vector<2x128xf32>
    %c0_5 = arith.constant 0 : index
    %c0_6 = arith.constant 0 : index
    %6 = vector.load %arg5[%c0_5, %c0_6] : memref<4x128xf32, #tpu.memory_space<vmem>>, vector<4x128xf32>
    %c0_7 = arith.constant 0 : index
    %c0_8 = arith.constant 0 : index
    %7 = vector.load %arg2[%c0_7, %c0_8] : memref<2x4xf32, #tpu.memory_space<vmem>>, vector<2x4xf32>
    %cst_9 = arith.constant dense<0.000000e+00> : vector<2x128xf32>
    %8 = tpu.matmul %7, %6, %cst_9 {dimension_numbers = #tpu.dot_dimension_numbers<[1], [0], [0], [1], [0, 0, 1, 1], [], []>, precision = #tpu.contract_precision<fp32>} : vector<2x4xf32>, vector<4x128xf32>, vector<2x128xf32> -> vector<2x128xf32>
    %9 = arith.addf %5, %8 : vector<2x128xf32>
    %c0_10 = arith.constant 0 : index
    %c0_11 = arith.constant 0 : index
    %10 = vector.load %arg6[%c0_10, %c0_11] : memref<24x128xf32, #tpu.memory_space<vmem>>, vector<24x128xf32>
    %c0_12 = arith.constant 0 : index
    %c0_13 = arith.constant 0 : index
    %11 = vector.load %arg3[%c0_12, %c0_13] : memref<2x24xf32, #tpu.memory_space<vmem>>, vector<2x24xf32>
    %cst_14 = arith.constant dense<0.000000e+00> : vector<2x128xf32>
    %12 = tpu.matmul %11, %10, %cst_14 {dimension_numbers = #tpu.dot_dimension_numbers<[1], [0], [0], [1], [0, 0, 1, 1], [], []>, precision = #tpu.contract_precision<fp32>} : vector<2x24xf32>, vector<24x128xf32>, vector<2x128xf32> -> vector<2x128xf32>
    %13 = arith.addf %9, %12 : vector<2x128xf32>
    %cst_15 = arith.constant 2.000000e-01 : f32
    %14 = vector.broadcast %cst_15 : f32 to vector<2x128xf32>
    %15 = arith.mulf %14, %13 : vector<2x128xf32>
    %16 = arith.maximumf %13, %15 : vector<2x128xf32>
    %c0_16 = arith.constant 0 : index
    %c0_17 = arith.constant 0 : index
    %17 = vector.load %arg8[%c0_16, %c0_17] : memref<128x128xf32, #tpu.memory_space<vmem>>, vector<128x128xf32>
    %c0_18 = arith.constant 0 : index
    %c0_19 = arith.constant 0 : index
    %18 = vector.load %arg9[%c0_18, %c0_19] : memref<1x128xf32, #tpu.memory_space<vmem>>, vector<1x128xf32>
    %cst_20 = arith.constant dense<0.000000e+00> : vector<2x128xf32>
    %19 = tpu.matmul %16, %17, %cst_20 {dimension_numbers = #tpu.dot_dimension_numbers<[1], [0], [0], [1], [0, 0, 1, 1], [], []>, precision = #tpu.contract_precision<fp32>} : vector<2x128xf32>, vector<128x128xf32>, vector<2x128xf32> -> vector<2x128xf32>
    %20 = vector.broadcast %18 : vector<1x128xf32> to vector<2x128xf32>
    %21 = arith.addf %19, %20 : vector<2x128xf32>
    %cst_21 = arith.constant 2.000000e-01 : f32
    %22 = vector.broadcast %cst_21 : f32 to vector<2x128xf32>
    %23 = arith.mulf %22, %21 : vector<2x128xf32>
    %24 = arith.maximumf %21, %23 : vector<2x128xf32>
    %c0_22 = arith.constant 0 : index
    %c0_23 = arith.constant 0 : index
    %25 = vector.load %arg10[%c0_22, %c0_23] : memref<4x128xf32, #tpu.memory_space<vmem>>, vector<4x128xf32>
    %c0_24 = arith.constant 0 : index
    %c0_25 = arith.constant 0 : index
    %26 = vector.load %arg11[%c0_24, %c0_25] : memref<1x1xf32, #tpu.memory_space<vmem>>, vector<1x1xf32>
    %cst_26 = arith.constant dense<0.000000e+00> : vector<4x2xf32>
    %27 = tpu.matmul %25, %24, %cst_26 {dimension_numbers = #tpu.dot_dimension_numbers<[1], [1], [0], [0], [0, 0, 1, 0], [], []>, precision = #tpu.contract_precision<fp32>} : vector<4x128xf32>, vector<2x128xf32>, vector<4x2xf32> -> vector<4x2xf32>
    %28 = vector.broadcast %26 : vector<1x1xf32> to vector<4x2xf32>
    %29 = arith.addf %27, %28 : vector<4x2xf32>
    %c0_27 = arith.constant 0 : index
    %c0_28 = arith.constant 0 : index
    %30 = vector.load %arg12[%c0_27, %c0_28] : memref<4x2xf32, #tpu.memory_space<vmem>>, vector<4x2xf32>
    tpu.vector_store %arg12[%c0_27, %c0_28], %29 {strides = array<i32>} : memref<4x2xf32, #tpu.memory_space<vmem>>, vector<4x2xf32>,
    return
  }
  func.func @transform_0(%arg0: i32) -> (i32, i32) {
    %c0_i32 = arith.constant 0 : i32
    %c0_i32_0 = arith.constant 0 : i32
    return %arg0, %c0_i32 : i32, i32
  }
  func.func @transform_1(%arg0: i32) -> (i32, i32) {
    %c0_i32 = arith.constant 0 : i32
    %c0_i32_0 = arith.constant 0 : i32
    return %arg0, %c0_i32 : i32, i32
  }
  func.func @transform_2(%arg0: i32) -> (i32, i32) {
    %c0_i32 = arith.constant 0 : i32
    %c0_i32_0 = arith.constant 0 : i32
    return %arg0, %c0_i32 : i32, i32
  }
  func.func @transform_3(%arg0: i32) -> (i32, i32) {
    %c0_i32 = arith.constant 0 : i32
    %c0_i32_0 = arith.constant 0 : i32
    %c0_i32_1 = arith.constant 0 : i32
    return %c0_i32, %c0_i32_0 : i32, i32
  }
  func.func @transform_4(%arg0: i32) -> (i32, i32) {
    %c0_i32 = arith.constant 0 : i32
    %c0_i32_0 = arith.constant 0 : i32
    %c0_i32_1 = arith.constant 0 : i32
    return %c0_i32, %c0_i32_0 : i32, i32
  }
  func.func @transform_5(%arg0: i32) -> (i32, i32) {
    %c0_i32 = arith.constant 0 : i32
    %c0_i32_0 = arith.constant 0 : i32
    %c0_i32_1 = arith.constant 0 : i32
    return %c0_i32, %c0_i32_0 : i32, i32
  }
  func.func @transform_6(%arg0: i32) -> (i32, i32) {
    %c0_i32 = arith.constant 0 : i32
    %c0_i32_0 = arith.constant 0 : i32
    %c0_i32_1 = arith.constant 0 : i32
    return %c0_i32, %c0_i32_0 : i32, i32
  }
  func.func @transform_7(%arg0: i32) -> (i32, i32) {
    %c0_i32 = arith.constant 0 : i32
    %c0_i32_0 = arith.constant 0 : i32
    %c0_i32_1 = arith.constant 0 : i32
    return %c0_i32, %c0_i32_0 : i32, i32
  }
  func.func @transform_8(%arg0: i32) -> (i32, i32) {
    %c0_i32 = arith.constant 0 : i32
    %c0_i32_0 = arith.constant 0 : i32
    %c0_i32_1 = arith.constant 0 : i32
    return %c0_i32, %c0_i32_0 : i32, i32
  }
  func.func @transform_9(%arg0: i32) -> (i32, i32) {
    %c0_i32 = arith.constant 0 : i32
    %c0_i32_0 = arith.constant 0 : i32
    %c0_i32_1 = arith.constant 0 : i32
    return %c0_i32, %c0_i32_0 : i32, i32
  }
  func.func @transform_10(%arg0: i32) -> (i32, i32) {
    %c0_i32 = arith.constant 0 : i32
    %c0_i32_0 = arith.constant 0 : i32
    %c0_i32_1 = arith.constant 0 : i32
    return %c0_i32, %c0_i32_0 : i32, i32
  }
  func.func @transform_11(%arg0: i32) -> (i32, i32) {
    %c0_i32 = arith.constant 0 : i32
    %c0_i32_0 = arith.constant 0 : i32
    return %c0_i32, %arg0 : i32, i32
  }
}

</mosaic_0001>

<bundles_post_ra>
// kernel: tpu_custom_call.1
= control target key start
LH: loop header
LB: loop body
LE: loop exit
PB: predicated region body
PF: predicated region fallthrough
CT: control target
= control target key end

     0   :  { %s4668_s0 = inlined_call_operand.vmem [shape: f32[2,100], index: 0, kind: input, shape index: {}]   ;;  %s4669_s1 = inlined_call_operand.hbm [shape: f32[2,4], index: 1, kind: input, shape index: {}]   ;;  %s4670_s2 = inlined_call_operand.hbm [shape: f32[2,24], index: 2, kind: input, shape index: {}]   ;;  %s4671_s3 = inlined_call_operand.hbm [shape: f32[100,128], index: 3, kind: input, shape index: {}]   ;;  %s4672_s4 = inlined_call_operand.vmem [shape: f32[4,128], index: 4, kind: input, shape index: {}]   ;;  %s4673_s5 = inlined_call_operand.hbm [shape: f32[24,128], index: 5, kind: input, shape index: {}]   ;;  %s4674_s6 = inlined_call_operand.vmem [shape: f32[1,128], index: 6, kind: input, shape index: {}]   ;;  %s4675_s7 = inlined_call_operand.hbm [shape: f32[128,128], index: 7, kind: input, shape index: {}]   ;;  %s4676_s8 = inlined_call_operand.vmem [shape: f32[1,128], index: 8, kind: input, shape index: {}]   ;;  %s4677_s9 = inlined_call_operand.vmem [shape: f32[4,128], index: 9, kind: input, shape index: {}]   ;;  %s4678_s10 = inlined_call_operand.<no memory space> [shape: f32[1,1], index: 10, kind: input, shape index: {}]   ;;  %s4679_s11 = inlined_call_operand.vmem [shape: f32[4,2], index: 11, kind: output, shape index: {}]  }
   0x1   :  { %v16_v0 = vstv %s4678_s10 }
   0x2   :  { %17 = vst [vmem:[#allocation2] sm:$0x1] %v16_v0 }
   0x3   :  { %18 = vsyncpa [#allocation4], 0 }
   0x4   :  { %19 = vsyncpa [#allocation6], 0 }
   0x5   :  { %20 = vsyncpa [#allocation9], 0  ;;  %s3997_s19 = smov [#allocation5]   ;;  %s3881_s23 = scalar_lea.hbm %s4670_s2, 32 }
   0x6   :  { %s39_s20 = sshll.u32 %s3997_s19, 4  ;;  %p3882_p0 = scmp.ne.s32.totalorder %s4670_s2, %s3881_s23  ;;  %s40_s20 = int_to_ptr.vmem [resolvable:$true] %s39_s20 }
   0x7   :  { %p3885_p1 = scmp.lt.u32.totalorder %s3881_s23, %s4670_s2 }
   0x9   :  { %p3887_p2 = pnand %p3885_p1, %p3882_p0 }
   0xb   :  { %3890 = shalt.err (!%p3887_p2)
}
   0xc   :  { %s3891_s10 = scalar_lea.vmem %s40_s20, 32  ;;  %p3896_p4 = scmp.lt.s32.totalorder %s40_s20, %s40_s20 }
   0xd   :  { %p3892_p3 = scmp.ne.s32.totalorder %s40_s20, %s3891_s10  ;;  %p3897_p5 = scmp.lt.s32.totalorder %s3891_s10, %s3891_s10 }
   0xf   :  { %p3898_p6 = por %p3897_p5, %p3896_p4 }
  0x11   :  { %p3899_p7 = pnand %p3898_p6, %p3892_p3 }
  0x13   :  { %3902 = shalt.err (!%p3899_p7)
}
  0x14   :  { %42 = dma.hbm_to_vmem [thread:$0]  %s4670_s2, 32, %s40_s20, [#allocation6]  }
  0x15   :  { %s3998_s30 = smov [#allocation8]   ;;  %s3999_s13 = smov [#allocation3]  }
  0x16   :  { %s62_s12 = sshll.u32 %s3998_s30, 4  ;;  %s29_s14 = sshll.u32 %s3999_s13, 4  ;;  %s63_s12 = int_to_ptr.vmem [resolvable:$true] %s62_s12  ;;  %s30_s14 = int_to_ptr.vmem [resolvable:$true] %s29_s14 }
  0x17   :  { %s3903_s17 = scalar_lea.hbm %s4673_s5, 384 }
  0x18   :  { %p3904_p8 = scmp.ne.s32.totalorder %s4673_s5, %s3903_s17  ;;  %p3907_p9 = scmp.lt.u32.totalorder %s3903_s17, %s4673_s5 }
  0x1a   :  { %p3909_p10 = pnand %p3907_p9, %p3904_p8 }
  0x1c   :  { %3912 = shalt.err (!%p3909_p10)
}
  0x1d   :  { %s3913_s2 = scalar_lea.vmem %s63_s12, 384  ;;  %p3918_p12 = scmp.lt.s32.totalorder %s63_s12, %s63_s12 }
  0x1e   :  { %p3914_p11 = scmp.ne.s32.totalorder %s63_s12, %s3913_s2  ;;  %p3919_p13 = scmp.lt.s32.totalorder %s3913_s2, %s3913_s2 }
  0x20   :  { %p3920_p0 = por %p3919_p13, %p3918_p12 }
  0x22   :  { %p3921_p1 = pnand %p3920_p0, %p3914_p11 }
  0x24   :  { %3924 = shalt.err (!%p3921_p1)
}
  0x25   :  { %s4000_s20 = smov 128   ;;  %s4001_s23 = smov 8  }
  0x26   :  { %68 = dma.hbm_to_vmem [thread:$0]  %s4673_s5, 384, %s63_s12, [#allocation9], %s4000_s20, %s4000_s20, %s4001_s23  }
  0x27   :  { %s3925_s10 = scalar_lea.hbm %s4669_s1, 32 }
  0x28   :  { %p3926_p2 = scmp.ne.s32.totalorder %s4669_s1, %s3925_s10  ;;  %p3929_p3 = scmp.lt.u32.totalorder %s3925_s10, %s4669_s1 }
  0x2a   :  { %p3931_p4 = pnand %p3929_p3, %p3926_p2 }
  0x2c   :  { %3934 = shalt.err (!%p3931_p4)
}
  0x2d   :  { %s3935_s15 = scalar_lea.vmem %s30_s14, 32  ;;  %p3940_p6 = scmp.lt.s32.totalorder %s30_s14, %s30_s14 }
  0x2e   :  { %p3936_p5 = scmp.ne.s32.totalorder %s30_s14, %s3935_s15  ;;  %p3941_p7 = scmp.lt.s32.totalorder %s3935_s15, %s3935_s15 }
  0x30   :  { %p3942_p8 = por %p3941_p7, %p3940_p6 }
  0x32   :  { %p3943_p9 = pnand %p3942_p8, %p3936_p5 }
  0x34   :  { %3946 = shalt.err (!%p3943_p9)
}
  0x35   :  { %32 = dma.hbm_to_vmem [thread:$0]  %s4669_s1, 32, %s30_s14, [#allocation4]  }
  0x36   :  { %s4002_s16 = smov [#allocation7]   ;;  %s4003_s18 = smov [#allocation10]  }
  0x37   :  { %s48_s17 = sshll.u32 %s4002_s16, 4  ;;  %s76_s19 = sshll.u32 %s4003_s18, 4  ;;  %s49_s17 = int_to_ptr.vmem [resolvable:$true] %s48_s17  ;;  %s77_s19 = int_to_ptr.vmem [resolvable:$true] %s76_s19 }
  0x38   :  { %s3947_s2 = scalar_lea.hbm %s4671_s3, 1664 }
  0x39   :  { %p3948_p10 = scmp.ne.s32.totalorder %s4671_s3, %s3947_s2  ;;  %p3951_p11 = scmp.lt.u32.totalorder %s3947_s2, %s4671_s3 }
  0x3b   :  { %p3953_p12 = pnand %p3951_p11, %p3948_p10 }
  0x3d   :  { %3956 = shalt.err (!%p3953_p12)
}
  0x3e   :  { %s3957_s1 = scalar_lea.vmem %s49_s17, 1664  ;;  %p3962_p0 = scmp.lt.s32.totalorder %s49_s17, %s49_s17 }
  0x3f   :  { %p3958_p13 = scmp.ne.s32.totalorder %s49_s17, %s3957_s1  ;;  %p3963_p1 = scmp.lt.s32.totalorder %s3957_s1, %s3957_s1 }
  0x41   :  { %p3964_p2 = por %p3963_p1, %p3962_p0 }
  0x43   :  { %p3965_p3 = pnand %p3964_p2, %p3958_p13 }
  0x45   :  { %3968 = shalt.err (!%p3965_p3)
}
  0x46   :  { %54 = dma.hbm_to_vmem [thread:$0]  %s4671_s3, 1664, %s49_s17, [#allocation6], %s4000_s20, %s4000_s20, %s4001_s23  }
  0x47   :  { %s3969_s30 = scalar_lea.hbm %s4675_s7, 2048 }
  0x48   :  { %p3970_p4 = scmp.ne.s32.totalorder %s4675_s7, %s3969_s30  ;;  %p3973_p5 = scmp.lt.u32.totalorder %s3969_s30, %s4675_s7 }
  0x4a   :  { %p3975_p6 = pnand %p3973_p5, %p3970_p4 }
  0x4c   :  { %3978 = shalt.err (!%p3975_p6)
}
  0x4d   :  { %s3979_s16 = scalar_lea.vmem %s77_s19, 2048  ;;  %p3984_p8 = scmp.lt.s32.totalorder %s77_s19, %s77_s19 }
  0x4e   :  { %p3980_p7 = scmp.ne.s32.totalorder %s77_s19, %s3979_s16  ;;  %p3985_p9 = scmp.lt.s32.totalorder %s3979_s16, %s3979_s16 }
  0x50   :  { %p3986_p10 = por %p3985_p9, %p3984_p8 }
  0x52   :  { %p3987_p11 = pnand %p3986_p10, %p3980_p7 }
  0x54   :  { %3990 = shalt.err (!%p3987_p11)
}
  0x55   :  { %82 = dma.hbm_to_vmem [thread:$0]  %s4675_s7, 2048, %s77_s19, [#allocation9], %s4000_s20, %s4000_s20, %s4001_s23  }
  0x56   :  { %3991 = dma.done.wait [#allocation4], 32  }
  0x57   :  { %3992 = vsyncadd [#allocation4], 4294967264 }
  0x58   :  { %3993 = dma.done.wait [#allocation6], 1696  }
  0x59   :  { %3994 = vsyncadd [#allocation6], 4294965600 }
  0x5a   :  { %3995 = dma.done.wait [#allocation9], 2432  }
  0x5b   :  { %3996 = vsyncadd [#allocation9], 4294964864  ;;  %v4004_v1 = vmov 0.0|0.0   ;;  %vm4005_vm0 = vmmov 0   ;;  %v4006_v2 = vmov 0.0   ;;  %v105_v3 = vld [vmem:[#allocation7] sm:$0xff] }
  0x5c   :  { %3542 = vmatprep.subr.bf16.mxu0 %v4004_v1  ;;  %3070 = vmatprep.mubr.msk.f32.mxu0 %vm4005_vm0, %v4006_v2  ;;  %v106_v4 = vld [vmem:[#allocation7 + $0x8] sm:$0xff]  ;;  %v107_v5 = vld [vmem:[#allocation7 + $0x10] sm:$0xff]  ;;  %v128_v6 = vand.u32 4294901760, %v105_v3  ;;  %v108_v8 = vld [vmem:[#allocation7 + $0x18] sm:$0xff]  ;;  %vm119_vm1 = vcmask 818176   ;;  %vm123_vm2 = vcmask 1043456  }
  0x5d   :  { %3668 = vmatprep.subr.bf16.mxu1 %v4004_v1  ;;  %3334 = vmatprep.mubr.msk.f32.mxu1 %vm4005_vm0, %v4006_v2  ;;  %v131_v7 = vand.u32 4294901760, %v106_v4  ;;  %v134_v9 = vand.u32 4294901760, %v107_v5  ;;  %v137_v10 = vand.u32 4294901760, %v108_v8  ;;  %v109_v11 = vld [vmem:[#allocation7 + $0x20] sm:$0xff]  ;;  %v110_v12 = vld [vmem:[#allocation7 + $0x28] sm:$0xff]  ;;  %v111_v17 = vld [vmem:[#allocation7 + $0x30] sm:$0xff] }
  0x5e   :  { %v140_v15 = vand.u32 4294901760, %v109_v11  ;;  %v143_v16 = vand.u32 4294901760, %v110_v12  ;;  %v112_v18 = vld [vmem:[#allocation7 + $0x38] sm:$0xff]  ;;  %v4155_v20 = vsub.f32 %v105_v3, %v128_v6  ;;  %v146_v22 = vand.u32 4294901760, %v111_v17  ;;  %v113_v26 = vld [vmem:[#allocation7 + $0x40] sm:$0xff]  ;;  %v114_v27 = vld [vmem:[#allocation7 + $0x48] sm:$0xff] }
  0x5f   :  { %v4146_v13 = vpack.c.bf16 %v131_v7, %v128_v6  ;;  %v4149_v14 = vpack.c.bf16 %v137_v10, %v134_v9  ;;  %v118_v19 = vld [vmem:[%s4668_s0] sm:$0x3]  ;;  %v149_v23 = vand.u32 4294901760, %v112_v18  ;;  %v4160_v25 = vsub.f32 %v106_v4, %v131_v7  ;;  %v115_v34 = vld [vmem:[#allocation7 + $0x50] sm:$0xff]  ;;  %v117_v45 = vld [vmem:[#allocation7 + $0x60] sm:$0xf] }
  0x60   :  { %v4158_v21 = vpack.c.bf16 %v143_v16, %v140_v15  ;;  %v121_v24 = vsel %vm119_vm1, %v118_v19, 0  ;;  %v4165_v29 = vsub.f32 %v107_v5, %v134_v9  ;;  %v4167_v30 = vsub.f32 %v108_v8, %v137_v10  ;;  %v116_v35 = vld [vmem:[#allocation7 + $0x58] sm:$0xff] }
  0x61   :  { %3544 = vmatpush3.bf16.msra.mxu0 %v4146_v13  ;;  %v4163_v28 = vand.u32 4294901760, %v121_v24  ;;  %v4170_v31 = vpack.c.bf16 %v149_v23, %v146_v22  ;;  %v152_v32 = vand.u32 4294901760, %v113_v26  ;;  %v155_v33 = vand.u32 4294901760, %v114_v27 }
  0x62   :  { %3545 = vmatprep.subr.bf16.mxu0 %v4004_v1  ;;  %v218_v36 = vand.u32 4294901760, %v4155_v20  ;;  %v225_v38 = vand.u32 4294901760, %v4160_v25  ;;  %v4178_v39 = vsub.f32 %v109_v11, %v140_v15  ;;  %v4180_v40 = vsub.f32 %v110_v12, %v143_v16 }
  0x63   :  { %v4175_v37 = vsub.f32 %v121_v24, %v4163_v28  ;;  %v4182_v41 = vsub.f32 %v111_v17, %v146_v22  ;;  %v158_v42 = vand.u32 4294901760, %v115_v34  ;;  %v161_v43 = vand.u32 4294901760, %v116_v35 }
  0x64   :  { %v4185_v44 = vpack.c.bf16 %v155_v33, %v152_v32  ;;  %v219_v46 = vsub.f32 %v4155_v20, %v218_v36  ;;  %v232_v47 = vand.u32 4294901760, %v4165_v29  ;;  %v239_v48 = vand.u32 4294901760, %v4167_v30 }
  0x65   :  { %3547 = vmatpush3.bf16.msra.mxu0 %v4149_v14  ;;  %v4190_v49 = vsub.f32 %v112_v18, %v149_v23  ;;  %v4193_v50 = vsub.f32 %v113_v26, %v152_v32  ;;  %v207_v51 = vand.u32 4294901760, %v4175_v37  ;;  %v226_v52 = vsub.f32 %v4160_v25, %v225_v38 }
  0x66   :  { %3548 = vmatprep.subr.bf16.mxu0 %v4004_v1  ;;  %v4197_v53 = vsub.f32 %v114_v27, %v155_v33  ;;  %v4199_v54 = vsub.f32 %v115_v34, %v158_v42  ;;  %v4201_v55 = vsub.f32 %v116_v35, %v161_v43  ;;  %v4203_v56 = vpack.c.bf16 %v161_v43, %v158_v42 }
  0x67   :  { %v125_v57 = vsel %vm123_vm2, %v117_v45, 0  ;;  %v246_v58 = vand.u32 4294901760, %v4178_v39  ;;  %v253_v59 = vand.u32 4294901760, %v4180_v40  ;;  %v220_v60 = vand.u32 4294901760, %v219_v46 }
  0x68   :  { %v233_v61 = vsub.f32 %v4165_v29, %v232_v47  ;;  %v240_v62 = vsub.f32 %v4167_v30, %v239_v48  ;;  %v260_v63 = vand.u32 4294901760, %v4182_v41  ;;  %v208_v0 = vsub.f32 %v4175_v37, %v207_v51 }
  0x69   :  { %3550 = vmatpush3.bf16.msra.mxu0 %v4158_v21  ;;  %v227_v3 = vand.u32 4294901760, %v226_v52  ;;  %v267_v4 = vand.u32 4294901760, %v4190_v49  ;;  %v274_v5 = vand.u32 4294901760, %v4193_v50  ;;  %v281_v6 = vand.u32 4294901760, %v4197_v53 }
  0x6a   :  { %3551 = vmatprep.subr.bf16.mxu0 %v4004_v1  ;;  %v288_v7 = vand.u32 4294901760, %v4199_v54  ;;  %v295_v8 = vand.u32 4294901760, %v4201_v55  ;;  %v4221_v9 = vpack.c.bf16 %v225_v38, %v218_v36  ;;  %v4223_v10 = vpack.c.bf16 %v239_v48, %v232_v47 }
  0x6b   :  { %v4225_v11 = vpack.c.bf16 %v253_v59, %v246_v58  ;;  %v4227_v12 = vpack.c.bf16 %v267_v4, %v260_v63  ;;  %v4230_v15 = vand.u32 4294901760, %v125_v57  ;;  %v4232_v16 = vpack.c.bf16 %v281_v6, %v274_v5 }
  0x6c   :  { %v4234_v17 = vpack.c.bf16 %v295_v8, %v288_v7  ;;  %v209_v18 = vand.u32 4294901760, %v208_v0  ;;  %v247_v19 = vsub.f32 %v4178_v39, %v246_v58  ;;  %v3561_v22 = vpack.c.bf16 %v227_v3, %v220_v60 }
  0x6d   :  { %3553 = vmatpush3.bf16.msra.mxu0 %v4170_v31  ;;  %v234_v23 = vand.u32 4294901760, %v233_v61  ;;  %v241_v24 = vand.u32 4294901760, %v240_v62  ;;  %v254_v26 = vsub.f32 %v4180_v40, %v253_v59  ;;  %v261_v34 = vsub.f32 %v4182_v41, %v260_v63 }
  0x6e   :  { %3554 = vmatprep.subr.bf16.mxu0 %v4004_v1  ;;  %v248_v27 = vand.u32 4294901760, %v247_v19  ;;  %v268_v35 = vsub.f32 %v4190_v49, %v267_v4  ;;  %v275_v36 = vsub.f32 %v4193_v50, %v274_v5  ;;  %v282_v45 = vsub.f32 %v4197_v53, %v281_v6 }
  0x6f   :  { %v3564_v32 = vpack.c.bf16 %v241_v24, %v234_v23  ;;  %v255_v33 = vand.u32 4294901760, %v254_v26  ;;  %v262_v42 = vand.u32 4294901760, %v261_v34  ;;  %v4250_v46 = vsub.f32 %v125_v57, %v4230_v15  ;;  %v736_v34 = vld [vmem:[%s4672_s4] sm:$0xf] }
  0x70   :  { %v269_v43 = vand.u32 4294901760, %v268_v35  ;;  %v276_v47 = vand.u32 4294901760, %v275_v36  ;;  %v283_v52 = vand.u32 4294901760, %v282_v45  ;;  %v289_v58 = vsub.f32 %v4199_v54, %v288_v7 }
  0x71   :  { %3556 = vmatpush3.bf16.msra.mxu0 %v4185_v44  ;;  %v3567_v38 = vpack.c.bf16 %v255_v33, %v248_v27  ;;  %v296_v59 = vsub.f32 %v4201_v55, %v295_v8  ;;  %v302_v63 = vand.u32 4294901760, %v4250_v46  ;;  %v3579_v4 = vpack.c.bf16 %v4160_v25, %v4155_v20  ;;  %v1681_v8 = vld [vmem:[#allocation10 + $0x30] sm:$0xff]  ;;  %v737_v33 = vld [vmem:[#allocation3] sm:$0x3] }
  0x72   :  { %3557 = vmatprep.subr.bf16.mxu0 %v4004_v1  ;;  %v3570_v48 = vpack.c.bf16 %v269_v43, %v262_v42  ;;  %v3573_v60 = vpack.c.bf16 %v283_v52, %v276_v47  ;;  %v290_v61 = vand.u32 4294901760, %v289_v58  ;;  %v3582_v5 = vpack.c.bf16 %v4167_v30, %v4165_v29  ;;  %v1675_v30 = vld [vmem:[#allocation10] sm:$0xff]  ;;  %v1195_v47 = vld [vmem:[#allocation5] sm:$0x3] }
  0x73   :  { %v297_v62 = vand.u32 4294901760, %v296_v59  ;;  %v303_v0 = vsub.f32 %v4250_v46, %v302_v63  ;;  %v3585_v6 = vpack.c.bf16 %v4180_v40, %v4178_v39  ;;  %v3588_v20 = vpack.c.bf16 %v4190_v49, %v4182_v41  ;;  %v1677_v39 = vld [vmem:[#allocation10 + $0x10] sm:$0xff]  ;;  %v1678_v49 = vld [vmem:[#allocation10 + $0x18] sm:$0xff] }
  0x74   :  { %v3591_v25 = vpack.c.bf16 %v4197_v53, %v4193_v50  ;;  %v3594_v29 = vpack.c.bf16 %v4201_v55, %v4199_v54  ;;  %v1699_v40 = vand.u32 4294901760, %v1675_v30  ;;  %v1705_v50 = vand.u32 4294901760, %v1677_v39  ;;  %v1680_v53 = vld [vmem:[#allocation10 + $0x28] sm:$0xff] }
  0x75   :  { %3559 = vmatpush3.bf16.msra.mxu0 %v4203_v56  ;;  %v3576_v57 = vpack.c.bf16 %v297_v62, %v290_v61  ;;  %v304_v3 = vand.u32 4294901760, %v303_v0  ;;  %v1708_v54 = vand.u32 4294901760, %v1678_v49  ;;  %v1714_v7 = vand.u32 4294901760, %v1680_v53  ;;  %v1194_v62 = vld [vmem:[#allocation8 + $0x10] sm:$0xff] }
  0x76   :  { %3068 = vmatprep.subr.mxu0 %v4006_v2  ;;  %v1717_v23 = vand.u32 4294901760, %v1681_v8  ;;  %vm738_vm3 = vcmask 31744   ;;  %vm1196_vm4 = vcmask 195584   ;;  %vm2798_vm5 = vcmask 11264  }
  0x77   :  { %v4334_v19 = vpack.c.bf16 %v1708_v54, %v1705_v50  ;;  %v740_v35 = vsel %vm738_vm3, %v737_v33, 0  ;;  %v1198_v58 = vsel %vm1196_vm4, %v1195_v47, 0 }
  0x78   :  { %v4343_v26 = vsub.f32 %v1681_v8, %v1717_v23  ;;  %v811_v36 = vand.u32 4294901760, %v740_v35  ;;  %v1268_v59 = vand.u32 4294901760, %v1198_v58 }
  0x79   :  { %3069 = vmatpush3.msra.mxu0 %v4230_v15 }
  0x7a   :  { %3560 = vmatprep.subr.bf16.mxu0 %v4004_v1  ;;  %3071 = vmatmul.mubr.f32.vlgmr.msra.gmra.mrb[0].mxu0 %v209_v18 }
  0x7b   :  { %3562 = vmatpush3.bf16.msra.mxu0 %v3561_v22  ;;  %3099 = vmatprep.mubr.msk.f32.mxu0 %vm4005_vm0, %v4006_v2  ;;  %v4336_v22 = vsub.f32 %v1680_v53, %v1714_v7 }
  0x7c   :  { %3563 = vmatprep.subr.bf16.mxu0 %v4004_v1 }
  0x7f   :  { %3565 = vmatpush3.bf16.msra.mxu0 %v3564_v32 }
  0x80   :  { %3566 = vmatprep.subr.bf16.mxu0 %v4004_v1 }
  0x83   :  { %3568 = vmatpush3.bf16.msra.mxu0 %v3567_v38 }
  0x84   :  { %3569 = vmatprep.subr.bf16.mxu0 %v4004_v1 }
  0x87   :  { %3571 = vmatpush3.bf16.msra.mxu0 %v3570_v48 }
  0x88   :  { %3572 = vmatprep.subr.bf16.mxu0 %v4004_v1 }
  0x8b   :  { %3574 = vmatpush3.bf16.msra.mxu0 %v3573_v60 }
  0x8c   :  { %3575 = vmatprep.subr.bf16.mxu0 %v4004_v1 }
  0x8f   :  { %3577 = vmatpush3.bf16.msra.mxu0 %v3576_v57  ;;  %v1207_v57 = vand.u32 4294901760, %v1194_v62 }
  0x90   :  { %3097 = vmatprep.subr.mxu0 %v4006_v2 }
  0x93   :  { %3098 = vmatpush3.msra.mxu0 %v304_v3 }
  0x94   :  { %3578 = vmatprep.subr.bf16.mxu0 %v4004_v1  ;;  %3100 = vmatmul.mubr.f32.vlgmr.msra.gmra.mrb[0].mxu0 %v4163_v28 }
  0x95   :  { %3580 = vmatpush3.bf16.msra.mxu0 %v3579_v4  ;;  %3128 = vmatprep.mubr.msk.f32.mxu0 %vm4005_vm0, %v4006_v2 }
  0x96   :  { %3581 = vmatprep.subr.bf16.mxu0 %v4004_v1 }
  0x99   :  { %3583 = vmatpush3.bf16.msra.mxu0 %v3582_v5 }
  0x9a   :  { %3584 = vmatprep.subr.bf16.mxu0 %v4004_v1 }
  0x9d   :  { %3586 = vmatpush3.bf16.msra.mxu0 %v3585_v6  ;;  %v1294_v6 = vsub.f32 %v1194_v62, %v1207_v57 }
  0x9e   :  { %3587 = vmatprep.subr.bf16.mxu0 %v4004_v1 }
  0xa1   :  { %3589 = vmatpush3.bf16.msra.mxu0 %v3588_v20 }
  0xa2   :  { %3590 = vmatprep.subr.bf16.mxu0 %v4004_v1 }
  0xa5   :  { %3592 = vmatpush3.bf16.msra.mxu0 %v3591_v25 }
  0xa6   :  { %3593 = vmatprep.subr.bf16.mxu0 %v4004_v1 }
  0xa9   :  { %3595 = vmatpush3.bf16.msra.mxu0 %v3594_v29 }
  0xaa   :  { %3126 = vmatprep.subr.mxu0 %v4006_v2 }
  0xad   :  { %3127 = vmatpush3.msra.mxu0 %v4250_v46 }
  0xae   :  { %3596 = vmatprep.subr.bf16.mxu0 %v4004_v1  ;;  %3129 = vmatmul.mubr.f32.vlgmr.msra.gmra.mrb[0].mxu0 %v4175_v37  ;;  %v1676_v37 = vld [vmem:[#allocation10 + $0x8] sm:$0xff] }
  0xaf   :  { %3598 = vmatpush3.bf16.msra.mxu0 %v4146_v13  ;;  %3157 = vmatprep.mubr.msk.f32.mxu0 %vm4005_vm0, %v4006_v2  ;;  %v1702_v41 = vand.u32 4294901760, %v1676_v37 }
  0xb0   :  { %3599 = vmatprep.subr.bf16.mxu0 %v4004_v1 }
  0xb3   :  { %3601 = vmatpush3.bf16.msra.mxu0 %v4149_v14 }
  0xb4   :  { %3602 = vmatprep.subr.bf16.mxu0 %v4004_v1 }
  0xb7   :  { %3604 = vmatpush3.bf16.msra.mxu0 %v4158_v21 }
  0xb8   :  { %3605 = vmatprep.subr.bf16.mxu0 %v4004_v1 }
  0xbb   :  { %3607 = vmatpush3.bf16.msra.mxu0 %v4170_v31 }
  0xbc   :  { %3608 = vmatprep.subr.bf16.mxu0 %v4004_v1 }
  0xbf   :  { %3610 = vmatpush3.bf16.msra.mxu0 %v4185_v44 }
  0xc0   :  { %3611 = vmatprep.subr.bf16.mxu0 %v4004_v1 }
  0xc3   :  { %3613 = vmatpush3.bf16.msra.mxu0 %v4203_v56 }
  0xc4   :  { %3155 = vmatprep.subr.mxu0 %v4006_v2 }
  0xc7   :  { %3156 = vmatpush3.msra.mxu0 %v4230_v15 }
  0xc8   :  { %3614 = vmatprep.subr.bf16.mxu0 %v4004_v1  ;;  %3158 = vmatmul.mubr.f32.vlgmr.msra.gmra.mrb[0].mxu0 %v207_v51  ;;  %v1679_v51 = vld [vmem:[#allocation10 + $0x20] sm:$0xff] }
  0xc9   :  { %3616 = vmatpush3.bf16.msra.mxu0 %v4221_v9  ;;  %3186 = vmatprep.mubr.msk.f32.mxu0 %vm4005_vm0, %v4006_v2  ;;  %v1711_v55 = vand.u32 4294901760, %v1679_v51  ;;  %v1682_v9 = vld [vmem:[#allocation10 + $0x38] sm:$0xff] }
  0xca   :  { %3617 = vmatprep.subr.bf16.mxu0 %v4004_v1  ;;  %v1720_v24 = vand.u32 4294901760, %v1682_v9 }
  0xcb   :  { %v4329_v18 = vsub.f32 %v1679_v51, %v1711_v55  ;;  %v4350_v32 = vpack.c.bf16 %v1714_v7, %v1711_v55  ;;  %v1684_v55 = vld [vmem:[#allocation10 + $0x48] sm:$0xff] }
  0xcc   :  { %v4345_v27 = vsub.f32 %v1682_v9, %v1720_v24  ;;  %v1726_v8 = vand.u32 4294901760, %v1684_v55 }
  0xcd   :  { %3619 = vmatpush3.bf16.msra.mxu0 %v4223_v10  ;;  %v4319_v10 = vpack.c.bf16 %v1702_v41, %v1699_v40 }
  0xce   :  { %3620 = vmatprep.subr.bf16.mxu0 %v4004_v1 }
  0xcf   :  { %3670 = vmatpush3.bf16.msra.mxu1 %v4319_v10 }
  0xd0   :  { %3671 = vmatprep.subr.bf16.mxu1 %v4004_v1 }
  0xd1   :  { %3622 = vmatpush3.bf16.msra.mxu0 %v4225_v11  ;;  %v4321_v11 = vsub.f32 %v1675_v30, %v1699_v40 }
  0xd2   :  { %3623 = vmatprep.subr.bf16.mxu0 %v4004_v1 }
  0xd3   :  { %3673 = vmatpush3.bf16.msra.mxu1 %v4334_v19 }
  0xd4   :  { %3674 = vmatprep.subr.bf16.mxu1 %v4004_v1 }
  0xd5   :  { %3625 = vmatpush3.bf16.msra.mxu0 %v4227_v12  ;;  %v4323_v12 = vsub.f32 %v1676_v37, %v1702_v41 }
  0xd6   :  { %3626 = vmatprep.subr.bf16.mxu0 %v4004_v1 }
  0xd7   :  { %3676 = vmatpush3.bf16.msra.mxu1 %v4350_v32 }
  0xd8   :  { %3677 = vmatprep.subr.bf16.mxu1 %v4004_v1 }
  0xd9   :  { %3628 = vmatpush3.bf16.msra.mxu0 %v4232_v16  ;;  %v4325_v16 = vsub.f32 %v1677_v39, %v1705_v50  ;;  %v1295_v39 = vand.u32 4294901760, %v1294_v6 }
  0xda   :  { %3629 = vmatprep.subr.bf16.mxu0 %v4004_v1 }
  0xdd   :  { %3631 = vmatpush3.bf16.msra.mxu0 %v4234_v17  ;;  %v4327_v17 = vsub.f32 %v1678_v49, %v1708_v54  ;;  %v1296_v49 = vsub.f32 %v1294_v6, %v1295_v39  ;;  %v1683_v54 = vld [vmem:[#allocation10 + $0x40] sm:$0xff] }
  0xde   :  { %3184 = vmatprep.subr.mxu0 %v4006_v2  ;;  %v1723_v7 = vand.u32 4294901760, %v1683_v54 }
  0xdf   :  { %v1297_v50 = vand.u32 4294901760, %v1296_v49 }
  0xe0   :  { %v4417_v9 = vpack.c.bf16 %v1726_v8, %v1723_v7 }
  0xe1   :  { %3185 = vmatpush3.msra.mxu0 %v302_v63  ;;  %v1269_v63 = vsub.f32 %v1198_v58, %v1268_v59  ;;  %v1799_v58 = vand.u32 4294901760, %v4323_v12 }
  0xe2   :  { %3632 = vmatprep.subr.bf16.mxu0 %v4004_v1  ;;  %3187 = vmatmul.mubr.f32.vlgmr.msra.gmra.mrb[0].mxu0 %v4163_v28 }
  0xe3   :  { %3634 = vmatpush3.bf16.msra.mxu0 %v4146_v13  ;;  %3215 = vmatprep.mubr.msk.f32.mxu0 %vm4005_vm0, %v4006_v2  ;;  %v4356_v13 = vpack.c.bf16 %v1720_v24, %v1717_v23  ;;  %v1270_v4 = vand.u32 4294901760, %v1269_v63  ;;  %v1685_v23 = vld [vmem:[#allocation10 + $0x50] sm:$0xff]  ;;  %v1686_v24 = vld [vmem:[#allocation10 + $0x58] sm:$0xff] }
  0xe4   :  { %3635 = vmatprep.subr.bf16.mxu0 %v4004_v1  ;;  %v1729_v33 = vand.u32 4294901760, %v1685_v23 }
  0xe5   :  { %3679 = vmatpush3.bf16.msra.mxu1 %v4356_v13  ;;  %v1271_v29 = vsub.f32 %v1269_v63, %v1270_v4 }
  0xe6   :  { %3680 = vmatprep.subr.bf16.mxu1 %v4004_v1 }
  0xe7   :  { %3637 = vmatpush3.bf16.msra.mxu0 %v4149_v14  ;;  %v743_v14 = vsel %vm123_vm2, %v736_v34, 0  ;;  %v1272_v40 = vand.u32 4294901760, %v1271_v29  ;;  %v1732_v34 = vand.u32 4294901760, %v1686_v24 }
  0xe8   :  { %3638 = vmatprep.subr.bf16.mxu0 %v4004_v1  ;;  %v746_v38 = vand.u32 4294901760, %v743_v14 }
  0xe9   :  { %3682 = vmatpush3.bf16.msra.mxu1 %v4417_v9 }
  0xea   :  { %v823_v42 = vsub.f32 %v743_v14, %v746_v38  ;;  %3683 = vmatprep.subr.bf16.mxu1 %v4004_v1  ;;  %v1687_v14 = vld [vmem:[#allocation10 + $0x60] sm:$0xff] }
  0xeb   :  { %3640 = vmatpush3.bf16.msra.mxu0 %v4158_v21  ;;  %v812_v21 = vsub.f32 %v740_v35, %v811_v36  ;;  %v4421_v35 = vpack.c.bf16 %v1732_v34, %v1729_v33 }
  0xec   :  { %3641 = vmatprep.subr.bf16.mxu0 %v4004_v1  ;;  %v824_v45 = vand.u32 4294901760, %v823_v42 }
  0xed   :  { %v813_v43 = vand.u32 4294901760, %v812_v21  ;;  %3685 = vmatpush3.bf16.msra.mxu1 %v4421_v35 }
  0xee   :  { %3686 = vmatprep.subr.bf16.mxu1 %v4004_v1 }
  0xef   :  { %3643 = vmatpush3.bf16.msra.mxu0 %v4170_v31  ;;  %v814_v31 = vsub.f32 %v812_v21, %v813_v43 }
  0xf0   :  { %3644 = vmatprep.subr.bf16.mxu0 %v4004_v1 }
  0xf1   :  { %v815_v46 = vand.u32 4294901760, %v814_v31  ;;  %v4427_v31 = vsub.f32 %v1683_v54, %v1723_v7 }
  0xf3   :  { %3646 = vmatpush3.bf16.msra.mxu0 %v4185_v44  ;;  %v825_v44 = vsub.f32 %v823_v42, %v824_v45 }
  0xf4   :  { %3647 = vmatprep.subr.bf16.mxu0 %v4004_v1 }
  0xf7   :  { %3649 = vmatpush3.bf16.msra.mxu0 %v4203_v56  ;;  %v826_v56 = vand.u32 4294901760, %v825_v44  ;;  %v4429_v44 = vsub.f32 %v1684_v55, %v1726_v8 }
  0xf8   :  { %3213 = vmatprep.subr.mxu0 %v4006_v2 }
  0xfb   :  { %3214 = vmatpush3.msra.mxu0 %v4230_v15  ;;  %v1193_v15 = vld [vmem:[#allocation8 + $0x8] sm:$0xff] }
  0xfc   :  { %3216 = vmatmul.mubr.f32.vlgmr.msra.gmra.mrb[0].mxu0 %v4163_v28  ;;  %3218 = vmatprep.subr.mxu0 %v4006_v2  ;;  %v1192_v28 = vld [vmem:[#allocation8] sm:$0xff]  ;;  %v1204_v52 = vand.u32 4294901760, %v1193_v15 }
  0xfd   :  { %3219 = vmatpush3.msra.mxu0 %v746_v38  ;;  %3220 = vmatprep.mubr.msk.f32.mxu0 %vm4005_vm0, %v4006_v2  ;;  %v1201_v48 = vand.u32 4294901760, %v1192_v28 }
  0xfe   :  { %3223 = vmatprep.subr.mxu0 %v4006_v2  ;;  %v1287_v61 = vsub.f32 %v1193_v15, %v1204_v52 }
  0xff   :  { %v1280_v60 = vsub.f32 %v1192_v28, %v1201_v48  ;;  %v3651_v5 = vpack.c.bf16 %v1204_v52, %v1201_v48  ;;  %v1792_v52 = vand.u32 4294901760, %v4321_v11 }
 0x100   :  { %v1288_v3 = vand.u32 4294901760, %v1287_v61 }
 0x101   :  { %v1281_v0 = vand.u32 4294901760, %v1280_v60  ;;  %v3657_v51 = vpack.c.bf16 %v1287_v61, %v1280_v60  ;;  %v1793_v62 = vsub.f32 %v4321_v11, %v1792_v52 }
 0x102   :  { %v1289_v25 = vsub.f32 %v1287_v61, %v1288_v3 }
 0x103   :  { %v1282_v20 = vsub.f32 %v1280_v60, %v1281_v0  ;;  %v3663_v53 = vpack.c.bf16 %v1288_v3, %v1281_v0  ;;  %v1813_v0 = vand.u32 4294901760, %v4327_v17  ;;  %v1794_v3 = vand.u32 4294901760, %v1793_v62 }
 0x104   :  { %3221 = vmatmul.mubr.f32.vlgmr.msra.gmra.mrb[0].mxu0 %v815_v46  ;;  %v1290_v37 = vand.u32 4294901760, %v1289_v25  ;;  %v4431_v46 = vsub.f32 %v1685_v23, %v1729_v33  ;;  %v1855_v33 = vand.u32 4294901760, %v4429_v44 }
 0x105   :  { %3224 = vmatpush3.msra.mxu0 %v826_v56  ;;  %3225 = vmatprep.mubr.msk.f32.mxu0 %vm4005_vm0, %v4006_v2  ;;  %v1283_v30 = vand.u32 4294901760, %v1282_v20  ;;  %v4433_v56 = vsub.f32 %v1686_v24, %v1732_v34  ;;  %v1848_v24 = vand.u32 4294901760, %v4427_v31 }
 0x106   :  { %3228 = vmatprep.subr.mxu0 %v4006_v2 }
 0x107   :  { %v3654_v41 = vpack.c.bf16 %v1290_v37, %v1283_v30  ;;  %v1820_v30 = vand.u32 4294901760, %v4329_v18  ;;  %v1827_v37 = vand.u32 4294901760, %v4336_v22 }
 0x10c   :  { %3226 = vmatmul.mubr.f32.vlgmr.msra.gmra.mrb[0].mxu0 %v811_v36 }
 0x10d   :  { %3229 = vmatpush3.msra.mxu0 %v823_v42  ;;  %3230 = vmatprep.mubr.msk.f32.mxu0 %vm4005_vm0, %v4006_v2 }
 0x10e   :  { %3233 = vmatprep.subr.mxu0 %v4006_v2 }
 0x114   :  { %3231 = vmatmul.mubr.f32.vlgmr.msra.gmra.mrb[0].mxu0 %v812_v21 }
 0x115   :  { %3234 = vmatpush3.msra.mxu0 %v746_v38  ;;  %3235 = vmatprep.mubr.msk.f32.mxu0 %vm4005_vm0, %v4006_v2 }
 0x116   :  { %3238 = vmatprep.subr.mxu0 %v4006_v2 }
 0x11c   :  { %3236 = vmatmul.mubr.f32.vlgmr.msra.gmra.mrb[0].mxu0 %v813_v43  ;;  %v1689_v43 = vld [vmem:[#allocation10 + $0x70] sm:$0xff] }
 0x11d   :  { %3239 = vmatpush3.msra.mxu0 %v824_v45  ;;  %3240 = vmatprep.mubr.msk.f32.mxu0 %vm4005_vm0, %v4006_v2  ;;  %v1690_v45 = vld [vmem:[#allocation10 + $0x78] sm:$0xff]  ;;  %v1741_v47 = vand.u32 4294901760, %v1689_v43 }
 0x11e   :  { %3243 = vmatprep.subr.mxu0 %v4006_v2  ;;  %v1744_v48 = vand.u32 4294901760, %v1690_v45 }
 0x11f   :  { %v4445_v60 = vsub.f32 %v1689_v43, %v1741_v47  ;;  %v1862_v43 = vand.u32 4294901760, %v4431_v46 }
 0x120   :  { %v4447_v61 = vsub.f32 %v1690_v45, %v1744_v48  ;;  %v4684_v45 = vand.u32 4294901760, %v4433_v56 }
 0x122   :  { %v1870_v62 = vsub.f32 %v4433_v56, %v4684_v45 }
 0x124   :  { %3241 = vmatmul.mubr.f32.vlgmr.msra.gmra.mrb[0].mxu0 %v811_v36 }
 0x125   :  { %3244 = vmatpush3.msra.mxu0 %v746_v38  ;;  %3245 = vmatprep.mubr.msk.f32.mxu0 %vm4005_vm0, %v4006_v2  ;;  %v1735_v38 = vand.u32 4294901760, %v1687_v14 }
 0x126   :  { %3650 = vmatprep.subr.bf16.mxu0 %v4004_v1 }
 0x127   :  { %v4436_v28 = vsub.f32 %v1687_v14, %v1735_v38  ;;  %v1849_v14 = vsub.f32 %v4427_v31, %v1848_v24 }
 0x12c   :  { %3246 = vmatmul.mubr.f32.vlgmr.msra.gmra.mrb[0].mxu0 %v811_v36  ;;  %v1688_v36 = vld [vmem:[#allocation10 + $0x68] sm:$0xff] }
 0x12d   :  { %3652 = vmatpush3.bf16.msra.mxu0 %v3651_v5  ;;  %3254 = vmatprep.mubr.msk.f32.mxu0 %vm4005_vm0, %v4006_v2  ;;  %v1738_v21 = vand.u32 4294901760, %v1688_v36 }
 0x12e   :  { %3252 = vmatprep.subr.mxu0 %v4006_v2 }
 0x12f   :  { %v4425_v42 = vpack.c.bf16 %v1738_v21, %v1735_v38  ;;  %v4438_v15 = vsub.f32 %v1688_v36, %v1738_v21  ;;  %v1856_v36 = vsub.f32 %v4429_v44, %v1855_v33  ;;  %v1850_v38 = vand.u32 4294901760, %v1849_v14 }
 0x131   :  { %3253 = vmatpush3.msra.mxu0 %v1207_v57  ;;  %3688 = vmatpush3.bf16.msra.mxu1 %v4425_v42  ;;  %v1857_v21 = vand.u32 4294901760, %v1856_v36 }
 0x132   :  { %3653 = vmatprep.subr.bf16.mxu0 %v4004_v1  ;;  %3689 = vmatprep.subr.bf16.mxu1 %v4004_v1 }
 0x134   :  { %3255 = vmatmul.mubr.f32.vlgmr.msra.gmra.mrb[0].mxu0 %v1272_v40  ;;  %v1821_v40 = vsub.f32 %v4329_v18, %v1820_v30 }
 0x135   :  { %3655 = vmatpush3.bf16.msra.mxu0 %v3654_v41  ;;  %3263 = vmatprep.mubr.msk.f32.mxu0 %vm4005_vm0, %v4006_v2  ;;  %v1828_v41 = vsub.f32 %v4336_v22, %v1827_v37 }
 0x136   :  { %3261 = vmatprep.subr.mxu0 %v4006_v2  ;;  %v1822_v49 = vand.u32 4294901760, %v1821_v40 }
 0x139   :  { %3262 = vmatpush3.msra.mxu0 %v1297_v50  ;;  %v1829_v50 = vand.u32 4294901760, %v1828_v41 }
 0x13a   :  { %3656 = vmatprep.subr.bf16.mxu0 %v4004_v1 }
 0x13b   :  { %v3699_v54 = vpack.c.bf16 %v1829_v50, %v1822_v49  ;;  %v4681_v49 = vand.u32 4294901760, %v4445_v60  ;;  %v4680_v50 = vand.u32 4294901760, %v4447_v61 }
 0x13c   :  { %3264 = vmatmul.mubr.f32.vlgmr.msra.gmra.mrb[0].mxu0 %v1268_v59 }
 0x13d   :  { %3658 = vmatpush3.bf16.msra.mxu0 %v3657_v51  ;;  %3272 = vmatprep.mubr.msk.f32.mxu0 %vm4005_vm0, %v4006_v2  ;;  %v1834_v51 = vand.u32 4294901760, %v4343_v26 }
 0x13e   :  { %3270 = vmatprep.subr.mxu0 %v4006_v2 }
 0x13f   :  { %v1835_v55 = vsub.f32 %v4343_v26, %v1834_v51 }
 0x141   :  { %3271 = vmatpush3.msra.mxu0 %v1294_v6  ;;  %v1814_v6 = vsub.f32 %v4327_v17, %v1813_v0  ;;  %v1836_v8 = vand.u32 4294901760, %v1835_v55 }
 0x142   :  { %3659 = vmatprep.subr.bf16.mxu0 %v4004_v1 }
 0x143   :  { %v1815_v29 = vand.u32 4294901760, %v1814_v6 }
 0x144   :  { %3273 = vmatmul.mubr.f32.vlgmr.msra.gmra.mrb[0].mxu0 %v1269_v63  ;;  %v1800_v63 = vsub.f32 %v4323_v12, %v1799_v58 }
 0x145   :  { %3661 = vmatpush3.bf16.msra.mxu0 %v3651_v5  ;;  %3281 = vmatprep.mubr.msk.f32.mxu0 %vm4005_vm0, %v4006_v2 }
 0x146   :  { %3279 = vmatprep.subr.mxu0 %v4006_v2 }
 0x149   :  { %3280 = vmatpush3.msra.mxu0 %v1207_v57 }
 0x14a   :  { %3662 = vmatprep.subr.bf16.mxu0 %v4004_v1 }
 0x14c   :  { %3282 = vmatmul.mubr.f32.vlgmr.msra.gmra.mrb[0].mxu0 %v1270_v4  ;;  %v1801_v4 = vand.u32 4294901760, %v1800_v63 }
 0x14d   :  { %3664 = vmatpush3.bf16.msra.mxu0 %v3663_v53  ;;  %3290 = vmatprep.mubr.msk.f32.mxu0 %vm4005_vm0, %v4006_v2  ;;  %v1841_v53 = vand.u32 4294901760, %v4345_v27 }
 0x14e   :  { %3288 = vmatprep.subr.mxu0 %v4006_v2  ;;  %v4465_v20 = vpack.c.bf16 %v1801_v4, %v1794_v3  ;;  %v1871_v3 = vand.u32 4294901760, %v1870_v62  ;;  %v4683_v4 = vand.u32 4294901760, %v4436_v28  ;;  %v3726_v62 = vpack.c.bf16 %v4345_v27, %v4343_v26 }
 0x14f   :  { %v1842_v7 = vsub.f32 %v4345_v27, %v1841_v53  ;;  %v4687_v26 = vand.u32 4294901760, %v4438_v15 }
 0x151   :  { %3289 = vmatpush3.msra.mxu0 %v1295_v39  ;;  %v1843_v23 = vand.u32 4294901760, %v1842_v7  ;;  %v1891_v7 = vsub.f32 %v4445_v60, %v4681_v49 }
 0x152   :  { %3665 = vmatprep.subr.bf16.mxu0 %v4004_v1 }
 0x153   :  { %v3702_v34 = vpack.c.bf16 %v1843_v23, %v1836_v8  ;;  %v1898_v8 = vsub.f32 %v4447_v61, %v4680_v50  ;;  %v1892_v23 = vand.u32 4294901760, %v1891_v7 }
 0x154   :  { %3291 = vmatmul.mubr.f32.vlgmr.msra.gmra.mrb[0].mxu0 %v1268_v59 }
 0x155   :  { %3667 = vmatpush3.bf16.msra.mxu0 %v3651_v5  ;;  %3299 = vmatprep.mubr.msk.f32.mxu0 %vm4005_vm0, %v4006_v2  ;;  %v1899_v14 = vand.u32 4294901760, %v1898_v8 }
 0x156   :  { %3297 = vmatprep.subr.mxu0 %v4006_v2 }
 0x157   :  { %v3714_v36 = vpack.c.bf16 %v1899_v14, %v1892_v23 }
 0x159   :  { %3298 = vmatpush3.msra.mxu0 %v1207_v57  ;;  %v1806_v57 = vand.u32 4294901760, %v4325_v16 }
 0x15b   :  { %v1807_v5 = vsub.f32 %v4325_v16, %v1806_v57 }
 0x15c   :  { %3300 = vmatmul.mubr.f32.vlgmr.msra.gmra.mrb[0].mxu0 %v1268_v59  ;;  %v4443_v59 = vpack.c.bf16 %v1744_v48, %v1741_v47  ;;  %v3705_v47 = vpack.c.bf16 %v1857_v21, %v1850_v38  ;;  %v1863_v48 = vsub.f32 %v4431_v46, %v1862_v43  ;;  %v3717_v38 = vpack.c.bf16 %v4323_v12, %v4321_v11 }
 0x15d   :  { %v1808_v25 = vand.u32 4294901760, %v1807_v5  ;;  %v4682_v5 = vand.u32 4294901760, %v4438_v15  ;;  %v3720_v21 = vpack.c.bf16 %v4327_v17, %v4325_v16  ;;  %v3771_v11 = vpack.c.bf16 %v1827_v37, %v1820_v30 }
 0x15e   :  { %3691 = vmatpush3.bf16.msra.mxu1 %v4443_v59  ;;  %v1864_v63 = vand.u32 4294901760, %v1863_v48  ;;  %v3723_v48 = vpack.c.bf16 %v4336_v22, %v4329_v18  ;;  %v3774_v12 = vpack.c.bf16 %v1841_v53, %v1834_v51  ;;  %v3777_v16 = vpack.c.bf16 %v1855_v33, %v1848_v24 }
 0x15f   :  { %3692 = vmatprep.subr.bf16.mxu1 %v4004_v1  ;;  %v4469_v39 = vpack.c.bf16 %v1815_v29, %v1808_v25  ;;  %v1877_v25 = vsub.f32 %v4436_v28, %v4683_v4  ;;  %v1884_v29 = vsub.f32 %v4438_v15, %v4682_v5  ;;  %v4685_v17 = vand.u32 4294901760, %v4433_v56 }
 0x160   :  { %v3708_v6 = vpack.c.bf16 %v1871_v3, %v1864_v63  ;;  %v3729_v63 = vpack.c.bf16 %v4429_v44, %v4427_v31  ;;  %v3732_v3 = vpack.c.bf16 %v4433_v56, %v4431_v46  ;;  %v4686_v22 = vand.u32 4294901760, %v4436_v28 }
 0x161   :  { %v1878_v40 = vand.u32 4294901760, %v1877_v25  ;;  %v1885_v41 = vand.u32 4294901760, %v1884_v29  ;;  %v3735_v25 = vpack.c.bf16 %v4438_v15, %v4436_v28  ;;  %v3738_v29 = vpack.c.bf16 %v4447_v61, %v4445_v60 }
 0x162   :  { %v3780_v18 = vpack.c.bf16 %v4685_v17, %v1862_v43  ;;  %v3783_v27 = vpack.c.bf16 %v4687_v26, %v4686_v22  ;;  %v4688_v31 = vand.u32 4294901760, %v4445_v60  ;;  %v4689_v44 = vand.u32 4294901760, %v4447_v61 }
 0x163   :  { %v3711_v55 = vpack.c.bf16 %v1885_v41, %v1878_v40  ;;  %v2807_v40 = vld [vmem:[%s4674_s6] ss:$0 sm:$0xff] }
 0x22f   :  { %v1668_v41 = vpop.f32.mrb[0].mxu0 }
 0x230   :  { %v3812_v7 = vadd.f32 %v2807_v40, %v1668_v41  ;;  %v3301_v8 = vpop.f32.mrb[1].mxu0 }
 0x232   :  { %v1673_v23 = vmul.f32 0.2, %v3812_v7 }
 0x234   :  { %v1674_v14 = vmax.f32 %v3812_v7, %v1673_v23 }
 0x236   :  { %v4536_v50 = vand.u32 4294901760, %v1674_v14 }
 0x238   :  { %v1780_v49 = vsub.f32 %v1674_v14, %v4536_v50 }
 0x23a   :  { %v1781_v5 = vand.u32 4294901760, %v1780_v49 }
 0x23c   :  { %v1782_v4 = vsub.f32 %v1780_v49, %v1781_v5 }
 0x23e   :  { %v1783_v45 = vand.u32 4294901760, %v1782_v4 }
 0x240   :  { %3335 = vmatmul.mubr.f32.vlgmr.msra.gmra.mrb[0].mxu1 %v1783_v45 }
 0x241   :  { %3694 = vmatpush3.bf16.msra.mxu1 %v4465_v20  ;;  %3369 = vmatprep.mubr.msk.f32.mxu1 %vm4005_vm0, %v4006_v2  ;;  %v3765_v20 = vpack.c.bf16 %v1799_v58, %v1792_v52  ;;  %v3786_v52 = vpack.c.bf16 %v4689_v44, %v4688_v31 }
 0x242   :  { %3695 = vmatprep.subr.bf16.mxu1 %v4004_v1 }
 0x245   :  { %3697 = vmatpush3.bf16.msra.mxu1 %v4469_v39  ;;  %v3768_v39 = vpack.c.bf16 %v1813_v0, %v1806_v57 }
 0x246   :  { %3698 = vmatprep.subr.bf16.mxu1 %v4004_v1 }
 0x249   :  { %3700 = vmatpush3.bf16.msra.mxu1 %v3699_v54 }
 0x24a   :  { %3701 = vmatprep.subr.bf16.mxu1 %v4004_v1 }
 0x24d   :  { %3703 = vmatpush3.bf16.msra.mxu1 %v3702_v34 }
 0x24e   :  { %3704 = vmatprep.subr.bf16.mxu1 %v4004_v1 }
 0x251   :  { %3706 = vmatpush3.bf16.msra.mxu1 %v3705_v47 }
 0x252   :  { %3707 = vmatprep.subr.bf16.mxu1 %v4004_v1 }
 0x255   :  { %3709 = vmatpush3.bf16.msra.mxu1 %v3708_v6 }
 0x256   :  { %3710 = vmatprep.subr.bf16.mxu1 %v4004_v1 }
 0x259   :  { %3712 = vmatpush3.bf16.msra.mxu1 %v3711_v55 }
 0x25a   :  { %3713 = vmatprep.subr.bf16.mxu1 %v4004_v1 }
 0x25d   :  { %3715 = vmatpush3.bf16.msra.mxu1 %v3714_v36 }
 0x25e   :  { %3716 = vmatprep.subr.bf16.mxu1 %v4004_v1 }
 0x260   :  { %3370 = vmatmul.mubr.f32.vlgmr.msra.gmra.mrb[0].mxu1 %v4536_v50 }
 0x261   :  { %3718 = vmatpush3.bf16.msra.mxu1 %v3717_v38  ;;  %3404 = vmatprep.mubr.msk.f32.mxu1 %vm4005_vm0, %v4006_v2 }
 0x262   :  { %3719 = vmatprep.subr.bf16.mxu1 %v4004_v1 }
 0x265   :  { %3721 = vmatpush3.bf16.msra.mxu1 %v3720_v21 }
 0x266   :  { %3722 = vmatprep.subr.bf16.mxu1 %v4004_v1 }
 0x269   :  { %3724 = vmatpush3.bf16.msra.mxu1 %v3723_v48 }
 0x26a   :  { %3725 = vmatprep.subr.bf16.mxu1 %v4004_v1 }
 0x26d   :  { %3727 = vmatpush3.bf16.msra.mxu1 %v3726_v62 }
 0x26e   :  { %3728 = vmatprep.subr.bf16.mxu1 %v4004_v1 }
 0x271   :  { %3730 = vmatpush3.bf16.msra.mxu1 %v3729_v63 }
 0x272   :  { %3731 = vmatprep.subr.bf16.mxu1 %v4004_v1 }
 0x275   :  { %3733 = vmatpush3.bf16.msra.mxu1 %v3732_v3 }
 0x276   :  { %3734 = vmatprep.subr.bf16.mxu1 %v4004_v1 }
 0x279   :  { %3736 = vmatpush3.bf16.msra.mxu1 %v3735_v25 }
 0x27a   :  { %3737 = vmatprep.subr.bf16.mxu1 %v4004_v1 }
 0x27d   :  { %3739 = vmatpush3.bf16.msra.mxu1 %v3738_v29 }
 0x27e   :  { %3740 = vmatprep.subr.bf16.mxu1 %v4004_v1 }
 0x280   :  { %3405 = vmatmul.mubr.f32.vlgmr.msra.gmra.mrb[0].mxu1 %v1780_v49 }
 0x281   :  { %3742 = vmatpush3.bf16.msra.mxu1 %v4319_v10  ;;  %3439 = vmatprep.mubr.msk.f32.mxu1 %vm4005_vm0, %v4006_v2 }
 0x282   :  { %3743 = vmatprep.subr.bf16.mxu1 %v4004_v1 }
 0x285   :  { %3745 = vmatpush3.bf16.msra.mxu1 %v4334_v19 }
 0x286   :  { %3746 = vmatprep.subr.bf16.mxu1 %v4004_v1 }
 0x289   :  { %3748 = vmatpush3.bf16.msra.mxu1 %v4350_v32 }
 0x28a   :  { %3749 = vmatprep.subr.bf16.mxu1 %v4004_v1 }
 0x28d   :  { %3751 = vmatpush3.bf16.msra.mxu1 %v4356_v13 }
 0x28e   :  { %3752 = vmatprep.subr.bf16.mxu1 %v4004_v1 }
 0x291   :  { %3754 = vmatpush3.bf16.msra.mxu1 %v4417_v9 }
 0x292   :  { %3755 = vmatprep.subr.bf16.mxu1 %v4004_v1 }
 0x295   :  { %3757 = vmatpush3.bf16.msra.mxu1 %v4421_v35 }
 0x296   :  { %3758 = vmatprep.subr.bf16.mxu1 %v4004_v1 }
 0x299   :  { %3760 = vmatpush3.bf16.msra.mxu1 %v4425_v42 }
 0x29a   :  { %3761 = vmatprep.subr.bf16.mxu1 %v4004_v1 }
 0x29d   :  { %3763 = vmatpush3.bf16.msra.mxu1 %v4443_v59 }
 0x29e   :  { %3764 = vmatprep.subr.bf16.mxu1 %v4004_v1 }
 0x2a0   :  { %3440 = vmatmul.mubr.f32.vlgmr.msra.gmra.mrb[0].mxu1 %v1781_v5 }
 0x2a1   :  { %3766 = vmatpush3.bf16.msra.mxu1 %v3765_v20  ;;  %3474 = vmatprep.mubr.msk.f32.mxu1 %vm4005_vm0, %v4006_v2 }
 0x2a2   :  { %3767 = vmatprep.subr.bf16.mxu1 %v4004_v1 }
 0x2a5   :  { %3769 = vmatpush3.bf16.msra.mxu1 %v3768_v39 }
 0x2a6   :  { %3770 = vmatprep.subr.bf16.mxu1 %v4004_v1 }
 0x2a9   :  { %3772 = vmatpush3.bf16.msra.mxu1 %v3771_v11 }
 0x2aa   :  { %3773 = vmatprep.subr.bf16.mxu1 %v4004_v1 }
 0x2ad   :  { %3775 = vmatpush3.bf16.msra.mxu1 %v3774_v12 }
 0x2ae   :  { %3776 = vmatprep.subr.bf16.mxu1 %v4004_v1 }
 0x2b1   :  { %3778 = vmatpush3.bf16.msra.mxu1 %v3777_v16 }
 0x2b2   :  { %3779 = vmatprep.subr.bf16.mxu1 %v4004_v1 }
 0x2b5   :  { %3781 = vmatpush3.bf16.msra.mxu1 %v3780_v18 }
 0x2b6   :  { %3782 = vmatprep.subr.bf16.mxu1 %v4004_v1 }
 0x2b9   :  { %3784 = vmatpush3.bf16.msra.mxu1 %v3783_v27 }
 0x2ba   :  { %3785 = vmatprep.subr.bf16.mxu1 %v4004_v1 }
 0x2bd   :  { %3787 = vmatpush3.bf16.msra.mxu1 %v3786_v52 }
 0x2be   :  { %3788 = vmatprep.subr.bf16.mxu1 %v4004_v1 }
 0x2c0   :  { %3475 = vmatmul.mubr.f32.vlgmr.msra.gmra.mrb[0].mxu1 %v4536_v50 }
 0x2c1   :  { %3790 = vmatpush3.bf16.msra.mxu1 %v4319_v10  ;;  %3509 = vmatprep.mubr.msk.f32.mxu1 %vm4005_vm0, %v4006_v2  ;;  %v2809_v10 = vld [vmem:[#allocation2] ss:$0 sm:$0xff] }
 0x2c2   :  { %3791 = vmatprep.subr.bf16.mxu1 %v4004_v1 }
 0x2c5   :  { %3793 = vmatpush3.bf16.msra.mxu1 %v4334_v19  ;;  %v4007_v19 = vmov 0  }
 0x2c6   :  { %3794 = vmatprep.subr.bf16.mxu1 %v4004_v1  ;;  %3880 = vset.pattern.permute.xlu0 %v4007_v19 }
 0x2c7   :  { %2349 = vperm.xlu0 %3880, %v2809_v10  }
 0x2c9   :  { %3796 = vmatpush3.bf16.msra.mxu1 %v4350_v32  ;;  %v2341_v32 = vld [vmem:[%s4677_s9] sm:$0xf] }
 0x2ca   :  { %3797 = vmatprep.subr.bf16.mxu1 %v4004_v1 }
 0x2cd   :  { %3799 = vmatpush3.bf16.msra.mxu1 %v4356_v13  ;;  %v2418_v13 = vand.u32 4294901760, %v2341_v32 }
 0x2ce   :  { %3800 = vmatprep.subr.bf16.mxu1 %v4004_v1 }
 0x2d1   :  { %3802 = vmatpush3.bf16.msra.mxu1 %v4417_v9  ;;  %v2419_v9 = vsub.f32 %v2341_v32, %v2418_v13 }
 0x2d2   :  { %3803 = vmatprep.subr.bf16.mxu1 %v4004_v1 }
 0x2d5   :  { %3805 = vmatpush3.bf16.msra.mxu1 %v4421_v35 }
 0x2d6   :  { %3806 = vmatprep.subr.bf16.mxu1 %v4004_v1 }
 0x2d9   :  { %3808 = vmatpush3.bf16.msra.mxu1 %v4425_v42  ;;  %v2420_v42 = vand.u32 4294901760, %v2419_v9 }
 0x2da   :  { %3809 = vmatprep.subr.bf16.mxu1 %v4004_v1  ;;  %v2808_v1 = vld [vmem:[%s4676_s8] ss:$0 sm:$0xff] }
 0x2db   :  { %v2421_v15 = vsub.f32 %v2419_v9, %v2420_v42 }
 0x2dd   :  { %3811 = vmatpush3.bf16.msra.mxu1 %v4443_v59  ;;  %v2422_v60 = vand.u32 4294901760, %v2421_v15 }
 0x2de   :  { %3512 = vmatprep.subr.mxu1 %v4006_v2 }
 0x2e0   :  { %3510 = vmatmul.mubr.f32.vlgmr.msra.gmra.mrb[0].mxu1 %v4536_v50 }
 0x2e1   :  { %3514 = vmatprep.mubr.msk.f32.mxu1 %vm4005_vm0, %v4006_v2 }
 0x346   :  { %v2350_v37 = vpop.permute.xlu0 %2349 }
 0x3b3   :  { %v2335_v35 = vpop.f32.mrb[0].mxu1 }
 0x3b4   :  { %v3813_v46 = vadd.f32 %v2808_v1, %v2335_v35  ;;  %v3511_v56 = vpop.f32.mrb[1].mxu1 }
 0x3b6   :  { %v2339_v28 = vmul.f32 0.2, %v3813_v46 }
 0x3b8   :  { %v2340_v58 = vmax.f32 %v3813_v46, %v2339_v28 }
 0x3ba   :  { %v2353_v59 = vand.u32 4294901760, %v2340_v58 }
 0x3bc   :  { %v2430_v61 = vsub.f32 %v2340_v58, %v2353_v59  ;;  %3513 = vmatpush3.xpose.msra.mxu1 %v2353_v59 }
 0x3bd   :  { %3517 = vmatprep.subr.mxu1 %v4006_v2 }
 0x3be   :  { %v2431_v57 = vand.u32 4294901760, %v2430_v61 }
 0x3bf   :  { %3515 = vmatmul.mubr.f32.vlgmr.msra.gmra.mrb[2].mxu1 %v2422_v60 }
 0x3c0   :  { %v2432_v0 = vsub.f32 %v2430_v61, %v2431_v57  ;;  %3519 = vmatprep.mubr.msk.f32.mxu1 %vm4005_vm0, %v4006_v2 }
 0x3c2   :  { %v2433_v30 = vand.u32 4294901760, %v2432_v0 }
 0x3c4   :  { %3518 = vmatpush3.xpose.msra.mxu1 %v2433_v30 }
 0x3c5   :  { %3522 = vmatprep.subr.mxu1 %v4006_v2 }
 0x3c7   :  { %3520 = vmatmul.mubr.f32.vlgmr.msra.gmra.mrb[2].mxu1 %v2418_v13 }
 0x3c8   :  { %3523 = vmatpush3.xpose.msra.mxu1 %v2430_v61  ;;  %3524 = vmatprep.mubr.msk.f32.mxu1 %vm4005_vm0, %v4006_v2 }
 0x3c9   :  { %3527 = vmatprep.subr.mxu1 %v4006_v2 }
 0x3cf   :  { %3525 = vmatmul.mubr.f32.vlgmr.msra.gmra.mrb[2].mxu1 %v2419_v9 }
 0x3d0   :  { %3528 = vmatpush3.xpose.msra.mxu1 %v2353_v59  ;;  %3529 = vmatprep.mubr.msk.f32.mxu1 %vm4005_vm0, %v4006_v2 }
 0x3d1   :  { %3532 = vmatprep.subr.mxu1 %v4006_v2 }
 0x3d7   :  { %3530 = vmatmul.mubr.f32.vlgmr.msra.gmra.mrb[2].mxu1 %v2420_v42 }
 0x3d8   :  { %3533 = vmatpush3.xpose.msra.mxu1 %v2431_v57  ;;  %3534 = vmatprep.mubr.msk.f32.mxu1 %vm4005_vm0, %v4006_v2 }
 0x3d9   :  { %3537 = vmatprep.subr.mxu1 %v4006_v2 }
 0x3df   :  { %3535 = vmatmul.mubr.f32.vlgmr.msra.gmra.mrb[2].mxu1 %v2418_v13 }
 0x3e0   :  { %3538 = vmatpush3.xpose.msra.mxu1 %v2353_v59  ;;  %3539 = vmatprep.mubr.msk.f32.mxu1 %vm4005_vm0, %v4006_v2 }
 0x3e7   :  { %3540 = vmatmul.mubr.f32.vlgmr.msra.gmra.mrb[2].mxu1 %v2418_v13 }
 0x4ba   :  { %v2794_v51 = vpop.f32.mrb[2].mxu1 }
 0x4bb   :  { %v3814_v53 = vadd.f32 %v2794_v51, %v2350_v37  ;;  %v3541_v54 = vpop.f32.mrb[3].mxu1 }
 0x4bd   :  { %2799 = vst.msk [vmem:[%s4679_s11] sm:$0xf] %vm2798_vm5, %v3814_v53 }
 0x4be   :  { %2804 = vsyncpa [#allocation4], 1 }
 0x4bf   :  { %2805 = vsyncpa [#allocation6], 1 }
 0x4c0   :  { %2806 = vsyncpa [#allocation9], 1 }

</bundles_post_ra>
